<compile_context>
chip_gen: v6e
topology: v6e:2x2x1
jax: 0.10.0
libtpu: 0.0.40
codegen_flags: <defaults>
</compile_context>

<pallas_src>
import jax
import jax.numpy as jnp
from jax.experimental import pallas as pl
from jax.experimental.pallas import tpu as pltpu

# ---- synthetic model dimensions (small, consistent with the forward) ----
BATCH = 2
SEQ = 8            # sequence length
HIDDEN = 32        # hidden_dim
NUM_HEADS = 2
HEAD_DIM = HIDDEN // NUM_HEADS
INTERMEDIATE = 64
VOCAB = 64
NUM_TYPES = 2
NUM_LABEL = 2
LN_EPS = 1e-12     # BERT LayerNorm eps
NEG_INF = -1e9

LANES = 128        # lane-dense packing width
DEC_PAD = 128      # decoder output padded 2 -> 128 lanes (lane-dense store)

# ---- packed matrix slab row offsets (all matrices [in, out], 128-lane padded) ----
W_QKV = 0                         # [H, 3H]   fused q|k|v projection
W_O = W_QKV + HIDDEN              # [H, H]    attention output projection
W_FF1 = W_O + HIDDEN              # [H, 64]   FF up (true 64 lanes)
W_FF2 = W_FF1 + HIDDEN            # [64, H]   FF down (no zero rows)
W_DEC = W_FF2 + INTERMEDIATE      # [H, 128]  decoder (2 -> 128 lane padded)
W_EMB = W_DEC + HIDDEN            # [VOCAB, H] word-embedding table
W_ROWS = W_EMB + VOCAB            # 256 rows x 128 lanes f32 = 128 KiB

# ---- packed vector/constant slab rows ----
V_BQKV, V_BO, V_B1, V_B2, V_BDEC = 0, 1, 2, 3, 4
V_EMB_G, V_EMB_B, V_LN1_G, V_LN1_B, V_LN2_G, V_LN2_B = 5, 6, 7, 8, 9, 10
V_SEL = 11                        # [B, B*S]        CLS row-selection matrix
V_STATIC = 16                     # [B*S, H]        tiled pos-emb + type-0 emb
V_MASK = 32                       # [NH*BS, NH*BS]  static block-diag additive mask
V_ROWS = 64                       # 64 x 128 f32 = 32 KiB


def _layer_norm(x, gamma, beta):
    mean = jnp.mean(x, axis=-1, keepdims=True)
    var = jnp.mean(jnp.square(x - mean), axis=-1, keepdims=True)
    return (x - mean) * jax.lax.rsqrt(var + LN_EPS) * gamma + beta


def _erf_poly(x):
    # Abramowitz & Stegun 7.1.26, |error| <= 1.5e-7 — only exp/abs/where.
    a1, a2, a3, a4, a5 = 0.254829592, -0.284496736, 1.421413741, -1.453152027, 1.061405429
    p = 0.3275911
    ax = jnp.abs(x)
    t = 1.0 / (1.0 + p * ax)
    poly = ((((a5 * t + a4) * t + a3) * t + a2) * t + a1) * t
    y = 1.0 - poly * jnp.exp(-ax * ax)
    return jnp.where(x < 0.0, -y, y)


def _gelu_exact(x):
    # exact (erf) GELU, matching PyTorch/BERT (not the tanh approximation)
    return 0.5 * x * (1.0 + _erf_poly(x * 0.7071067811865476))


def bert_block_cls_decoder_kernel(ids_ref, mask_ref, w_ref, v_ref, out_ref):
    """Whole batch, one invocation: embed -> LN -> transformer block -> CLS -> decoder."""
    H, NH, HD, S, B = HIDDEN, NUM_HEADS, HEAD_DIM, SEQ, BATCH
    BS = B * S
    E = NH * BS                                     # heads stacked on sublanes

    # ---- unpack packed bias / LN / constant rows (static slices) ----
    bqkv = v_ref[V_BQKV:V_BQKV + 1, 0:3 * H]
    bo = v_ref[V_BO:V_BO + 1, 0:H]
    b1 = v_ref[V_B1:V_B1 + 1, 0:INTERMEDIATE]
    b2 = v_ref[V_B2:V_B2 + 1, 0:H]
    bdec = v_ref[V_BDEC:V_BDEC + 1, 0:DEC_PAD]
    emb_g = v_ref[V_EMB_G:V_EMB_G + 1, 0:H]
    emb_b = v_ref[V_EMB_B:V_EMB_B + 1, 0:H]
    ln1_g = v_ref[V_LN1_G:V_LN1_G + 1, 0:H]
    ln1_b = v_ref[V_LN1_B:V_LN1_B + 1, 0:H]
    ln2_g = v_ref[V_LN2_G:V_LN2_G + 1, 0:H]
    ln2_b = v_ref[V_LN2_B:V_LN2_B + 1, 0:H]
    sel = v_ref[V_SEL:V_SEL + B, 0:BS]               # [B, BS] CLS selection
    static_emb = v_ref[V_STATIC:V_STATIC + BS, 0:H]  # [BS, H] pos + type-0 emb
    mask_static = v_ref[V_MASK:V_MASK + E, 0:E]      # [E, E]  block-diag (head,batch)

    # ---- embedding: one-hot gather on the (idle) MXU + static pos/type rows ----
    ids_col = ids_ref[...]                                          # [BS, 1] int32
    vocab_iota = jax.lax.broadcasted_iota(jnp.int32, (BS, VOCAB), 1)
    onehot = (vocab_iota == ids_col).astype(jnp.float32)            # [BS, VOCAB]
    word_tbl = w_ref[W_EMB:W_EMB + VOCAB, 0:H]                      # [VOCAB, H]
    emb = jnp.dot(onehot, word_tbl, preferred_element_type=jnp.float32) + static_emb
    x = _layer_norm(emb, emb_g, emb_b)                              # [BS, H]

    # ---- additive attention mask: packed static block-diag + runtime padding ----
    # Kept in f32 on purpose: cross-block (-1e9) + padding (-1e9) = -2e9 is safe.
    pad_add = (1.0 - mask_ref[...].astype(jnp.float32)) * NEG_INF   # [1, BS]
    pad_ext = jnp.concatenate([pad_add] * NH, axis=1)               # [1, E] per-head tile
    add_mask = mask_static + pad_ext                                # [E, E]

    # ---- fused QKV projection: one [BS,H] x [H,3H] MXU matmul ----
    wqkv = w_ref[W_QKV:W_QKV + H, 0:3 * H]
    qkv = jnp.dot(x, wqkv, preferred_element_type=jnp.float32) + bqkv   # [BS, 3H]

    # ---- multi-head attention, all heads & batch elems in ONE set of matmuls ----
    # Heads are stacked on the sublane axis ([NH*BS, HD]); the packed mask is
    # block-diagonal over (head, batch) so a single [E,E] softmax is exact.
    q_all = jnp.concatenate([qkv[:, h * HD:(h + 1) * HD] for h in range(NH)], axis=0)
    k_all = jnp.concatenate([qkv[:, H + h * HD:H + (h + 1) * HD] for h in range(NH)], axis=0)
    v_all = jnp.concatenate([qkv[:, 2 * H + h * HD:2 * H + (h + 1) * HD] for h in range(NH)], axis=0)

    scale = 1.0 / (HD ** 0.5)
    s_all = jax.lax.dot_general(q_all, k_all, (((1,), (1,)), ((), ())),
                                preferred_element_type=jnp.float32) * scale
    s_all = s_all + add_mask                                        # [E, E]
    s_all = s_all - jnp.max(s_all, axis=-1, keepdims=True)
    p = jnp.exp(s_all)
    p = p * pl.reciprocal(jnp.sum(p, axis=-1, keepdims=True), approx=True)
    ctx_all = jnp.dot(p, v_all, preferred_element_type=jnp.float32)  # [E, HD]

    # restore head-concat layout [BS, H] and do ONE output projection
    ctx = jnp.concatenate([ctx_all[h * BS:(h + 1) * BS, :] for h in range(NH)], axis=1)
    wo = w_ref[W_O:W_O + H, 0:H]
    attn = jnp.dot(ctx, wo, preferred_element_type=jnp.float32) + bo
    h1 = _layer_norm(x + attn, ln1_g, ln1_b)

    # ---- feed-forward (true 64-lane intermediate, no zero-row contraction) ----
    w1 = w_ref[W_FF1:W_FF1 + H, 0:INTERMEDIATE]
    ff = _gelu_exact(jnp.dot(h1, w1, preferred_element_type=jnp.float32) + b1)   # [BS, 64]
    w2 = w_ref[W_FF2:W_FF2 + INTERMEDIATE, 0:H]
    ff = jnp.dot(ff, w2, preferred_element_type=jnp.float32) + b2               # [BS, H]
    h2 = _layer_norm(h1 + ff, ln2_g, ln2_b)

    # ---- CLS pooling (rows b*S) via packed selection matmul; dropout = identity (eval) ----
    cls = jnp.dot(sel, h2, preferred_element_type=jnp.float32)       # [B, H]

    # ---- BinaryDecoder linear, lane-dense 128-wide store ----
    # TODO(synk): BinaryDecoder internals are not defined in the source file;
    # assumed to be nn.Linear(hidden_dim, num_label).
    wdec = w_ref[W_DEC:W_DEC + H, 0:DEC_PAD]
    out_ref[...] = jnp.dot(cls, wdec, preferred_element_type=jnp.float32) + bdec  # [B, 128]


@jax.jit
def binary_bert_classifier_forward(input_ids, attention_mask, params):
    """One Pallas kernel; returns lane-dense [B, 128] logits (consumer slices :NUM_LABEL)."""
    B, S = input_ids.shape
    # free (contiguous) reshapes only — no gather / arithmetic outside the kernel
    ids_col = input_ids.reshape(B * S, 1).astype(jnp.int32)
    mask_row = attention_mask.reshape(1, B * S).astype(jnp.int32)

    out = pl.pallas_call(
        bert_block_cls_decoder_kernel,
        out_shape=jax.ShapeDtypeStruct((B, DEC_PAD), jnp.float32),
        grid_spec=pltpu.PrefetchScalarGridSpec(
            num_scalar_prefetch=0,
            grid=(1,),                                              # single invocation
            in_specs=[
                pl.BlockSpec((B * S, 1), lambda i: (0, 0)),          # input_ids column
                pl.BlockSpec((1, B * S), lambda i: (0, 0)),          # raw int mask row
                pl.BlockSpec((W_ROWS, LANES), lambda i: (0, 0)),     # packed matrices + vocab
                pl.BlockSpec((V_ROWS, LANES), lambda i: (0, 0)),     # packed biases/LN/consts
            ],
            out_specs=pl.BlockSpec((B, DEC_PAD), lambda i: (0, 0)),
        ),
        compiler_params=pltpu.CompilerParams(
            dimension_semantics=("arbitrary",)),
    )(ids_col, mask_row, params["w_packed"], params["v_packed"])
    return out                                                      # [B, 128]


def make_params(key):
    """Deterministic synthetic parameters (no checkpoint load) + packed buffers."""
    keys = iter(jax.random.split(key, 24))

    def w(shape, scale=0.05):
        return (scale * jax.random.normal(next(keys), shape)).astype(jnp.float32)

    def ln_g(shape):
        return (1.0 + 0.05 * jax.random.normal(next(keys), shape)).astype(jnp.float32)

    p = {
        "word_emb": w((VOCAB, HIDDEN)),
        "pos_emb": w((SEQ, HIDDEN)),
        "type_emb": w((NUM_TYPES, HIDDEN)),
        "emb_ln_g": ln_g((1, HIDDEN)), "emb_ln_b": w((1, HIDDEN)),
        "wq": w((HIDDEN, HIDDEN)), "bq": w((1, HIDDEN)),
        "wk": w((HIDDEN, HIDDEN)), "bk": w((1, HIDDEN)),
        "wv": w((HIDDEN, HIDDEN)), "bv": w((1, HIDDEN)),
        "wo": w((HIDDEN, HIDDEN)), "bo": w((1, HIDDEN)),
        "ln1_g": ln_g((1, HIDDEN)), "ln1_b": w((1, HIDDEN)),
        "w1": w((HIDDEN, INTERMEDIATE)), "b1": w((1, INTERMEDIATE)),
        "w2": w((INTERMEDIATE, HIDDEN)), "b2": w((1, HIDDEN)),
        "ln2_g": ln_g((1, HIDDEN)), "ln2_b": w((1, HIDDEN)),
        "wdec": w((HIDDEN, NUM_LABEL)), "bdec": w((1, NUM_LABEL)),
    }

    def pad2(a, rows, cols):
        return jnp.pad(a, ((0, rows - a.shape[0]), (0, cols - a.shape[1])))

    wqkv = jnp.concatenate([p["wq"], p["wk"], p["wv"]], axis=1)      # [H, 3H]
    bqkv = jnp.concatenate([p["bq"], p["bk"], p["bv"]], axis=1)      # [1, 3H]

    # ---- matrix slab (includes the word-embedding table) ----
    p["w_packed"] = jnp.concatenate([
        pad2(wqkv, HIDDEN, LANES),               # rows   0: 32  fused QKV
        pad2(p["wo"], HIDDEN, LANES),            # rows  32: 64  attn output proj
        pad2(p["w1"], HIDDEN, LANES),            # rows  64: 96  FF up   (64 real lanes)
        pad2(p["w2"], INTERMEDIATE, LANES),      # rows  96:160  FF down (no zero rows)
        pad2(p["wdec"], HIDDEN, LANES),          # rows 160:192  decoder (2->128 lanes)
        pad2(p["word_emb"], VOCAB, LANES),       # rows 192:256  vocab table
    ], axis=0)
    assert p["w_packed"].shape == (W_ROWS, LANES)

    BS = BATCH * SEQ
    E = NUM_HEADS * BS

    # static (input-independent) embedding rows: position + token-type-0
    # (matches the forward's position_ids=None -> arange(S), token_type_ids=None -> 0)
    static_emb = jnp.tile(p["pos_emb"], (BATCH, 1)) + p["type_emb"][0][None, :]   # [BS, H]

    # static additive attention mask, block-diagonal over (head, batch)
    ridx = jnp.arange(E)
    same_head = (ridx[:, None] // BS) == (ridx[None, :] // BS)
    same_batch = ((ridx[:, None] % BS) // SEQ) == ((ridx[None, :] % BS) // SEQ)
    mask_static = jnp.where(same_head & same_batch, 0.0, NEG_INF).astype(jnp.float32)

    # CLS row-selection matrix (selects rows b*S)
    sel = (jnp.arange(BS)[None, :] == (jnp.arange(BATCH) * SEQ)[:, None]).astype(jnp.float32)

    p["v_packed"] = jnp.concatenate([
        pad2(bqkv, 1, LANES), pad2(p["bo"], 1, LANES), pad2(p["b1"], 1, LANES),
        pad2(p["b2"], 1, LANES), pad2(p["bdec"], 1, LANES),
        pad2(p["emb_ln_g"], 1, LANES), pad2(p["emb_ln_b"], 1, LANES),
        pad2(p["ln1_g"], 1, LANES), pad2(p["ln1_b"], 1, LANES),
        pad2(p["ln2_g"], 1, LANES), pad2(p["ln2_b"], 1, LANES),
        pad2(sel, BATCH, LANES),                                   # rows 11:13
        jnp.zeros((V_STATIC - V_SEL - BATCH, LANES), jnp.float32), # rows 13:16
        pad2(static_emb, BS, LANES),                               # rows 16:32
        pad2(mask_static, E, LANES),                               # rows 32:64
    ], axis=0)
    assert p["v_packed"].shape == (V_ROWS, LANES)
    return p


def reference_forward(input_ids, attention_mask, params):
    """Pure-JAX reference (mirrors the PyTorch forward) for a correctness check."""
    HP = jax.lax.Precision.HIGHEST
    B, S = input_ids.shape
    pos_ids = jnp.arange(S, dtype=jnp.int32)
    type_ids = jnp.zeros((B, S), dtype=jnp.int32)
    emb = (params["word_emb"][input_ids]
           + params["pos_emb"][pos_ids][None, :, :]
           + params["type_emb"][type_ids]).astype(jnp.float32)
    x = _layer_norm(emb, params["emb_ln_g"], params["emb_ln_b"])          # [B,S,H]

    q = jnp.dot(x, params["wq"], precision=HP) + params["bq"]
    k = jnp.dot(x, params["wk"], precision=HP) + params["bk"]
    v = jnp.dot(x, params["wv"], precision=HP) + params["bv"]
    q4 = q.reshape(B, S, NUM_HEADS, HEAD_DIM)
    k4 = k.reshape(B, S, NUM_HEADS, HEAD_DIM)
    v4 = v.reshape(B, S, NUM_HEADS, HEAD_DIM)
    add = ((1.0 - attention_mask.astype(jnp.float32)) * NEG_INF)[:, None, None, :]
    scores = jnp.einsum('bqhd,bkhd->bhqk', q4, k4, precision=HP) / (HEAD_DIM ** 0.5) + add
    prob = jax.nn.softmax(scores, axis=-1)
    ctx = jnp.einsum('bhqk,bkhd->bqhd', prob, v4, precision=HP).reshape(B, S, HIDDEN)
    attn = jnp.dot(ctx, params["wo"], precision=HP) + params["bo"]
    h1 = _layer_norm(x + attn, params["ln1_g"], params["ln1_b"])

    ff = jax.nn.gelu(jnp.dot(h1, params["w1"], precision=HP) + params["b1"],
                     approximate=False)
    ff = jnp.dot(ff, params["w2"], precision=HP) + params["b2"]
    h2 = _layer_norm(h1 + ff, params["ln2_g"], params["ln2_b"])

    cls = h2[:, 0, :]                                                    # CLS pooling
    return jnp.dot(cls, params["wdec"], precision=HP) + params["bdec"]   # decoder


if __name__ == "__main__":
    key = jax.random.PRNGKey(0)
    pkey, ikey = jax.random.split(key)
    params = make_params(pkey)

    input_ids = jax.random.randint(ikey, (BATCH, SEQ), 0, VOCAB, dtype=jnp.int32)
    attention_mask = jnp.ones((BATCH, SEQ), dtype=jnp.int32)

    out_padded = binary_bert_classifier_forward(input_ids, attention_mask, params)
    out_padded = jax.block_until_ready(out_padded)
    assert out_padded.shape == (BATCH, DEC_PAD) and out_padded.dtype == jnp.float32

    # slice to num_label at the consumer (feedback: don't pay a separate launch for it)
    pred = out_padded[:, :NUM_LABEL]
    assert pred.shape == (BATCH, NUM_LABEL)

    ref = jax.block_until_ready(reference_forward(input_ids, attention_mask, params))
    # tolerance slightly relaxed vs 1e-3 for the EUP approx-reciprocal softmax
    assert jnp.allclose(pred, ref, atol=2e-3, rtol=2e-3), (pred, ref)

    print("KERNEL_OK")
</pallas_src>

<mosaic_0001>
module attributes {stable_mosaic.version = 11 : i64} {
  func.func @bert_block_cls_decoder_kernel(%arg0: i32, %arg1: memref<16x1xi32, #tpu.memory_space<vmem>>, %arg2: memref<1x16xi32, #tpu.memory_space<vmem>>, %arg3: memref<256x128xf32, #tpu.memory_space<vmem>>, %arg4: memref<64x128xf32, #tpu.memory_space<vmem>>, %arg5: memref<2x128xf32, #tpu.memory_space<vmem>>) attributes {dimension_semantics = [#tpu.dimension_semantics<arbitrary>], iteration_bounds = array<i64: 1>, scalar_prefetch = 0 : i64, scratch_operands = 0 : i64, tpu.core_type = #tpu.core_type<tc>, window_params = [{pipeline_mode = #tpu.pipeline_mode<synchronous>, transform_indices = @transform_0, window_bounds = array<i64: 16, 1>}, {pipeline_mode = #tpu.pipeline_mode<synchronous>, transform_indices = @transform_1, window_bounds = array<i64: 1, 16>}, {pipeline_mode = #tpu.pipeline_mode<synchronous>, transform_indices = @transform_2, window_bounds = array<i64: 256, 128>}, {pipeline_mode = #tpu.pipeline_mode<synchronous>, transform_indices = @transform_3, window_bounds = array<i64: 64, 128>}, {pipeline_mode = #tpu.pipeline_mode<synchronous>, transform_indices = @transform_4, window_bounds = array<i64: 2, 128>}]} {
    %c0 = arith.constant 0 : index
    %c0_0 = arith.constant 0 : index
    %0 = vector.load %arg4[%c0, %c0_0] : memref<64x128xf32, #tpu.memory_space<vmem>>, vector<1x96xf32>
    %c1 = arith.constant 1 : index
    %c0_1 = arith.constant 0 : index
    %1 = vector.load %arg4[%c1, %c0_1] : memref<64x128xf32, #tpu.memory_space<vmem>>, vector<1x32xf32>
    %c2 = arith.constant 2 : index
    %c0_2 = arith.constant 0 : index
    %2 = vector.load %arg4[%c2, %c0_2] : memref<64x128xf32, #tpu.memory_space<vmem>>, vector<1x64xf32>
    %c3 = arith.constant 3 : index
    %c0_3 = arith.constant 0 : index
    %3 = vector.load %arg4[%c3, %c0_3] : memref<64x128xf32, #tpu.memory_space<vmem>>, vector<1x32xf32>
    %c4 = arith.constant 4 : index
    %c0_4 = arith.constant 0 : index
    %4 = vector.load %arg4[%c4, %c0_4] : memref<64x128xf32, #tpu.memory_space<vmem>>, vector<1x128xf32>
    %c5 = arith.constant 5 : index
    %c0_5 = arith.constant 0 : index
    %5 = vector.load %arg4[%c5, %c0_5] : memref<64x128xf32, #tpu.memory_space<vmem>>, vector<1x32xf32>
    %c6 = arith.constant 6 : index
    %c0_6 = arith.constant 0 : index
    %6 = vector.load %arg4[%c6, %c0_6] : memref<64x128xf32, #tpu.memory_space<vmem>>, vector<1x32xf32>
    %c7 = arith.constant 7 : index
    %c0_7 = arith.constant 0 : index
    %7 = vector.load %arg4[%c7, %c0_7] : memref<64x128xf32, #tpu.memory_space<vmem>>, vector<1x32xf32>
    %c8 = arith.constant 8 : index
    %c0_8 = arith.constant 0 : index
    %8 = vector.load %arg4[%c8, %c0_8] : memref<64x128xf32, #tpu.memory_space<vmem>>, vector<1x32xf32>
    %c9 = arith.constant 9 : index
    %c0_9 = arith.constant 0 : index
    %9 = vector.load %arg4[%c9, %c0_9] : memref<64x128xf32, #tpu.memory_space<vmem>>, vector<1x32xf32>
    %c10 = arith.constant 10 : index
    %c0_10 = arith.constant 0 : index
    %10 = vector.load %arg4[%c10, %c0_10] : memref<64x128xf32, #tpu.memory_space<vmem>>, vector<1x32xf32>
    %c11 = arith.constant 11 : index
    %c0_11 = arith.constant 0 : index
    %11 = vector.load %arg4[%c11, %c0_11] : memref<64x128xf32, #tpu.memory_space<vmem>>, vector<2x16xf32>
    %c16 = arith.constant 16 : index
    %c0_12 = arith.constant 0 : index
    %12 = vector.load %arg4[%c16, %c0_12] : memref<64x128xf32, #tpu.memory_space<vmem>>, vector<16x32xf32>
    %c32 = arith.constant 32 : index
    %c0_13 = arith.constant 0 : index
    %13 = vector.load %arg4[%c32, %c0_13] : memref<64x128xf32, #tpu.memory_space<vmem>>, vector<32x32xf32>
    %c0_14 = arith.constant 0 : index
    %c0_15 = arith.constant 0 : index
    %14 = vector.load %arg1[%c0_14, %c0_15] : memref<16x1xi32, #tpu.memory_space<vmem>>, vector<16x1xi32>
    %15 = tpu.iota {dimensions = array<i32: 1>} : vector<16x64xi32>
    %16 = vector.broadcast %14 : vector<16x1xi32> to vector<16x64xi32>
    %17 = arith.cmpi eq, %15, %16 : vector<16x64xi32>
    %18 = arith.extui %17 : vector<16x64xi1> to vector<16x64xi32>
    %19 = arith.sitofp %18 : vector<16x64xi32> to vector<16x64xf32>
    %c192 = arith.constant 192 : index
    %c0_16 = arith.constant 0 : index
    %20 = vector.load %arg3[%c192, %c0_16] : memref<256x128xf32, #tpu.memory_space<vmem>>, vector<64x32xf32>
    %cst = arith.constant dense<0.000000e+00> : vector<16x32xf32>
    %21 = tpu.matmul %19, %20, %cst {dimension_numbers = #tpu.dot_dimension_numbers<[1], [0], [0], [1], [0, 0, 1, 1], [], []>} : vector<16x64xf32>, vector<64x32xf32>, vector<16x32xf32> -> vector<16x32xf32>
    %22 = arith.addf %21, %12 : vector<16x32xf32>
    %cst_17 = arith.constant dense<0.000000e+00> : vector<16xf32>
    %23 = vector.multi_reduction <add>, %22, %cst_17 [1] : vector<16x32xf32> to vector<16xf32>
    %24 = vector.shape_cast %23 : vector<16xf32> to vector<16x1xf32>
    %cst_18 = arith.constant 3.200000e+01 : f32
    %25 = vector.broadcast %cst_18 : f32 to vector<16x1xf32>
    %26 = arith.divf %24, %25 : vector<16x1xf32>
    %27 = vector.broadcast %26 : vector<16x1xf32> to vector<16x32xf32>
    %28 = arith.subf %22, %27 : vector<16x32xf32>
    %29 = arith.mulf %28, %28 : vector<16x32xf32>
    %cst_19 = arith.constant dense<0.000000e+00> : vector<16xf32>
    %30 = vector.multi_reduction <add>, %29, %cst_19 [1] : vector<16x32xf32> to vector<16xf32>
    %31 = vector.shape_cast %30 : vector<16xf32> to vector<16x1xf32>
    %cst_20 = arith.constant 3.200000e+01 : f32
    %32 = vector.broadcast %cst_20 : f32 to vector<16x1xf32>
    %33 = arith.divf %31, %32 : vector<16x1xf32>
    %34 = vector.broadcast %26 : vector<16x1xf32> to vector<16x32xf32>
    %35 = arith.subf %22, %34 : vector<16x32xf32>
    %cst_21 = arith.constant 9.99999996E-13 : f32
    %36 = vector.broadcast %cst_21 : f32 to vector<16x1xf32>
    %37 = arith.addf %33, %36 : vector<16x1xf32>
    %38 = math.rsqrt %37 : vector<16x1xf32>
    %39 = vector.broadcast %38 : vector<16x1xf32> to vector<16x32xf32>
    %40 = arith.mulf %35, %39 : vector<16x32xf32>
    %41 = vector.broadcast %5 : vector<1x32xf32> to vector<16x32xf32>
    %42 = arith.mulf %40, %41 : vector<16x32xf32>
    %43 = vector.broadcast %6 : vector<1x32xf32> to vector<16x32xf32>
    %44 = arith.addf %42, %43 : vector<16x32xf32>
    %c0_22 = arith.constant 0 : index
    %c0_23 = arith.constant 0 : index
    %45 = vector.load %arg2[%c0_22, %c0_23] : memref<1x16xi32, #tpu.memory_space<vmem>>, vector<1x16xi32>
    %46 = arith.sitofp %45 : vector<1x16xi32> to vector<1x16xf32>
    %cst_24 = arith.constant 1.000000e+00 : f32
    %47 = vector.broadcast %cst_24 : f32 to vector<1x16xf32>
    %48 = arith.subf %47, %46 : vector<1x16xf32>
    %cst_25 = arith.constant -1.000000e+09 : f32
    %49 = vector.broadcast %cst_25 : f32 to vector<1x16xf32>
    %50 = arith.mulf %48, %49 : vector<1x16xf32>
    %51 = tpu.concatenate %50, %50 in 1 : vector<1x16xf32>, vector<1x16xf32> -> vector<1x32xf32>
    %52 = vector.broadcast %51 : vector<1x32xf32> to vector<32x32xf32>
    %53 = arith.addf %13, %52 : vector<32x32xf32>
    %c0_26 = arith.constant 0 : index
    %c0_27 = arith.constant 0 : index
    %54 = vector.load %arg3[%c0_26, %c0_27] : memref<256x128xf32, #tpu.memory_space<vmem>>, vector<32x96xf32>
    %cst_28 = arith.constant dense<0.000000e+00> : vector<16x96xf32>
    %55 = tpu.matmul %44, %54, %cst_28 {dimension_numbers = #tpu.dot_dimension_numbers<[1], [0], [0], [1], [0, 0, 1, 1], [], []>} : vector<16x32xf32>, vector<32x96xf32>, vector<16x96xf32> -> vector<16x96xf32>
    %56 = vector.broadcast %0 : vector<1x96xf32> to vector<16x96xf32>
    %57 = arith.addf %55, %56 : vector<16x96xf32>
    %58 = vector.extract_strided_slice %57 {offsets = [0, 0], sizes = [16, 16], strides = [1, 1]} : vector<16x96xf32> to vector<16x16xf32>
    %59 = vector.extract_strided_slice %57 {offsets = [0, 16], sizes = [16, 16], strides = [1, 1]} : vector<16x96xf32> to vector<16x16xf32>
    %60 = tpu.concatenate %58, %59 in 0 : vector<16x16xf32>, vector<16x16xf32> -> vector<32x16xf32>
    %61 = vector.extract_strided_slice %57 {offsets = [0, 32], sizes = [16, 16], strides = [1, 1]} : vector<16x96xf32> to vector<16x16xf32>
    %62 = vector.extract_strided_slice %57 {offsets = [0, 48], sizes = [16, 16], strides = [1, 1]} : vector<16x96xf32> to vector<16x16xf32>
    %63 = tpu.concatenate %61, %62 in 0 : vector<16x16xf32>, vector<16x16xf32> -> vector<32x16xf32>
    %64 = vector.extract_strided_slice %57 {offsets = [0, 64], sizes = [16, 16], strides = [1, 1]} : vector<16x96xf32> to vector<16x16xf32>
    %65 = vector.extract_strided_slice %57 {offsets = [0, 80], sizes = [16, 16], strides = [1, 1]} : vector<16x96xf32> to vector<16x16xf32>
    %66 = tpu.concatenate %64, %65 in 0 : vector<16x16xf32>, vector<16x16xf32> -> vector<32x16xf32>
    %cst_29 = arith.constant dense<0.000000e+00> : vector<32x32xf32>
    %67 = tpu.matmul %60, %63, %cst_29 {dimension_numbers = #tpu.dot_dimension_numbers<[1], [1], [0], [0], [0, 0, 1, 0], [], []>} : vector<32x16xf32>, vector<32x16xf32>, vector<32x32xf32> -> vector<32x32xf32>
    %cst_30 = arith.constant 2.500000e-01 : f32
    %68 = vector.broadcast %cst_30 : f32 to vector<32x32xf32>
    %69 = arith.mulf %67, %68 : vector<32x32xf32>
    %70 = arith.addf %69, %53 : vector<32x32xf32>
    %cst_31 = arith.constant dense<0xFF800000> : vector<32xf32>
    %71 = vector.multi_reduction <maximumf>, %70, %cst_31 [1] : vector<32x32xf32> to vector<32xf32>
    %72 = vector.shape_cast %71 : vector<32xf32> to vector<32x1xf32>
    %73 = vector.broadcast %72 : vector<32x1xf32> to vector<32x32xf32>
    %74 = arith.subf %70, %73 : vector<32x32xf32>
    %75 = math.exp %74 : vector<32x32xf32>
    %cst_32 = arith.constant dense<0.000000e+00> : vector<32xf32>
    %76 = vector.multi_reduction <add>, %75, %cst_32 [1] : vector<32x32xf32> to vector<32xf32>
    %77 = vector.shape_cast %76 : vector<32xf32> to vector<32x1xf32>
    %78 = tpu.reciprocal %77 {approx = true} : vector<32x1xf32> -> vector<32x1xf32>
    %79 = vector.broadcast %78 : vector<32x1xf32> to vector<32x32xf32>
    %80 = arith.mulf %75, %79 : vector<32x32xf32>
    %cst_33 = arith.constant dense<0.000000e+00> : vector<32x16xf32>
    %81 = tpu.matmul %80, %66, %cst_33 {dimension_numbers = #tpu.dot_dimension_numbers<[1], [0], [0], [1], [0, 0, 1, 1], [], []>} : vector<32x32xf32>, vector<32x16xf32>, vector<32x16xf32> -> vector<32x16xf32>
    %82 = vector.extract_strided_slice %81 {offsets = [0, 0], sizes = [16, 16], strides = [1, 1]} : vector<32x16xf32> to vector<16x16xf32>
    %83 = vector.extract_strided_slice %81 {offsets = [16, 0], sizes = [16, 16], strides = [1, 1]} : vector<32x16xf32> to vector<16x16xf32>
    %84 = tpu.concatenate %82, %83 in 1 : vector<16x16xf32>, vector<16x16xf32> -> vector<16x32xf32>
    %c32_34 = arith.constant 32 : index
    %c0_35 = arith.constant 0 : index
    %85 = vector.load %arg3[%c32_34, %c0_35] : memref<256x128xf32, #tpu.memory_space<vmem>>, vector<32x32xf32>
    %cst_36 = arith.constant dense<0.000000e+00> : vector<16x32xf32>
    %86 = tpu.matmul %84, %85, %cst_36 {dimension_numbers = #tpu.dot_dimension_numbers<[1], [0], [0], [1], [0, 0, 1, 1], [], []>} : vector<16x32xf32>, vector<32x32xf32>, vector<16x32xf32> -> vector<16x32xf32>
    %87 = vector.broadcast %1 : vector<1x32xf32> to vector<16x32xf32>
    %88 = arith.addf %86, %87 : vector<16x32xf32>
    %89 = arith.addf %44, %88 : vector<16x32xf32>
    %cst_37 = arith.constant dense<0.000000e+00> : vector<16xf32>
    %90 = vector.multi_reduction <add>, %89, %cst_37 [1] : vector<16x32xf32> to vector<16xf32>
    %91 = vector.shape_cast %90 : vector<16xf32> to vector<16x1xf32>
    %cst_38 = arith.constant 3.200000e+01 : f32
    %92 = vector.broadcast %cst_38 : f32 to vector<16x1xf32>
    %93 = arith.divf %91, %92 : vector<16x1xf32>
    %94 = vector.broadcast %93 : vector<16x1xf32> to vector<16x32xf32>
    %95 = arith.subf %89, %94 : vector<16x32xf32>
    %96 = arith.mulf %95, %95 : vector<16x32xf32>
    %cst_39 = arith.constant dense<0.000000e+00> : vector<16xf32>
    %97 = vector.multi_reduction <add>, %96, %cst_39 [1] : vector<16x32xf32> to vector<16xf32>
    %98 = vector.shape_cast %97 : vector<16xf32> to vector<16x1xf32>
    %cst_40 = arith.constant 3.200000e+01 : f32
    %99 = vector.broadcast %cst_40 : f32 to vector<16x1xf32>
    %100 = arith.divf %98, %99 : vector<16x1xf32>
    %101 = vector.broadcast %93 : vector<16x1xf32> to vector<16x32xf32>
    %102 = arith.subf %89, %101 : vector<16x32xf32>
    %cst_41 = arith.constant 9.99999996E-13 : f32
    %103 = vector.broadcast %cst_41 : f32 to vector<16x1xf32>
    %104 = arith.addf %100, %103 : vector<16x1xf32>
    %105 = math.rsqrt %104 : vector<16x1xf32>
    %106 = vector.broadcast %105 : vector<16x1xf32> to vector<16x32xf32>
    %107 = arith.mulf %102, %106 : vector<16x32xf32>
    %108 = vector.broadcast %7 : vector<1x32xf32> to vector<16x32xf32>
    %109 = arith.mulf %107, %108 : vector<16x32xf32>
    %110 = vector.broadcast %8 : vector<1x32xf32> to vector<16x32xf32>
    %111 = arith.addf %109, %110 : vector<16x32xf32>
    %c64 = arith.constant 64 : index
    %c0_42 = arith.constant 0 : index
    %112 = vector.load %arg3[%c64, %c0_42] : memref<256x128xf32, #tpu.memory_space<vmem>>, vector<32x64xf32>
    %cst_43 = arith.constant dense<0.000000e+00> : vector<16x64xf32>
    %113 = tpu.matmul %111, %112, %cst_43 {dimension_numbers = #tpu.dot_dimension_numbers<[1], [0], [0], [1], [0, 0, 1, 1], [], []>} : vector<16x32xf32>, vector<32x64xf32>, vector<16x64xf32> -> vector<16x64xf32>
    %114 = vector.broadcast %2 : vector<1x64xf32> to vector<16x64xf32>
    %115 = arith.addf %113, %114 : vector<16x64xf32>
    %cst_44 = arith.constant 5.000000e-01 : f32
    %116 = vector.broadcast %cst_44 : f32 to vector<16x64xf32>
    %117 = arith.mulf %116, %115 : vector<16x64xf32>
    %cst_45 = arith.constant 0.707106769 : f32
    %118 = vector.broadcast %cst_45 : f32 to vector<16x64xf32>
    %119 = arith.mulf %115, %118 : vector<16x64xf32>
    %120 = math.absf %119 : vector<16x64xf32>
    %cst_46 = arith.constant 0.327591091 : f32
    %121 = vector.broadcast %cst_46 : f32 to vector<16x64xf32>
    %122 = arith.mulf %121, %120 : vector<16x64xf32>
    %cst_47 = arith.constant 1.000000e+00 : f32
    %123 = vector.broadcast %cst_47 : f32 to vector<16x64xf32>
    %124 = arith.addf %123, %122 : vector<16x64xf32>
    %cst_48 = arith.constant 1.000000e+00 : f32
    %125 = vector.broadcast %cst_48 : f32 to vector<16x64xf32>
    %126 = arith.divf %125, %124 : vector<16x64xf32>
    %cst_49 = arith.constant 1.06140542 : f32
    %127 = vector.broadcast %cst_49 : f32 to vector<16x64xf32>
    %128 = arith.mulf %127, %126 : vector<16x64xf32>
    %cst_50 = arith.constant -1.45315206 : f32
    %129 = vector.broadcast %cst_50 : f32 to vector<16x64xf32>
    %130 = arith.addf %128, %129 : vector<16x64xf32>
    %131 = arith.mulf %130, %126 : vector<16x64xf32>
    %cst_51 = arith.constant 1.42141378 : f32
    %132 = vector.broadcast %cst_51 : f32 to vector<16x64xf32>
    %133 = arith.addf %131, %132 : vector<16x64xf32>
    %134 = arith.mulf %133, %126 : vector<16x64xf32>
    %cst_52 = arith.constant -0.284496725 : f32
    %135 = vector.broadcast %cst_52 : f32 to vector<16x64xf32>
    %136 = arith.addf %134, %135 : vector<16x64xf32>
    %137 = arith.mulf %136, %126 : vector<16x64xf32>
    %cst_53 = arith.constant 0.254829586 : f32
    %138 = vector.broadcast %cst_53 : f32 to vector<16x64xf32>
    %139 = arith.addf %137, %138 : vector<16x64xf32>
    %140 = arith.mulf %139, %126 : vector<16x64xf32>
    %cst_54 = arith.constant 0.000000e+00 : f32
    %141 = vector.broadcast %cst_54 : f32 to vector<16x64xf32>
    %142 = arith.subf %141, %120 : vector<16x64xf32>
    %143 = arith.mulf %142, %120 : vector<16x64xf32>
    %144 = math.exp %143 : vector<16x64xf32>
    %145 = arith.mulf %140, %144 : vector<16x64xf32>
    %cst_55 = arith.constant 1.000000e+00 : f32
    %146 = vector.broadcast %cst_55 : f32 to vector<16x64xf32>
    %147 = arith.subf %146, %145 : vector<16x64xf32>
    %cst_56 = arith.constant 0.000000e+00 : f32
    %148 = vector.broadcast %cst_56 : f32 to vector<16x64xf32>
    %149 = arith.cmpf olt, %119, %148 : vector<16x64xf32>
    %cst_57 = arith.constant 0.000000e+00 : f32
    %150 = vector.broadcast %cst_57 : f32 to vector<16x64xf32>
    %151 = arith.subf %150, %147 : vector<16x64xf32>
    %152 = arith.select %149, %151, %147 : vector<16x64xi1>, vector<16x64xf32>
    %cst_58 = arith.constant 1.000000e+00 : f32
    %153 = vector.broadcast %cst_58 : f32 to vector<16x64xf32>
    %154 = arith.addf %153, %152 : vector<16x64xf32>
    %155 = arith.mulf %117, %154 : vector<16x64xf32>
    %c96 = arith.constant 96 : index
    %c0_59 = arith.constant 0 : index
    %156 = vector.load %arg3[%c96, %c0_59] : memref<256x128xf32, #tpu.memory_space<vmem>>, vector<64x32xf32>
    %cst_60 = arith.constant dense<0.000000e+00> : vector<16x32xf32>
    %157 = tpu.matmul %155, %156, %cst_60 {dimension_numbers = #tpu.dot_dimension_numbers<[1], [0], [0], [1], [0, 0, 1, 1], [], []>} : vector<16x64xf32>, vector<64x32xf32>, vector<16x32xf32> -> vector<16x32xf32>
    %158 = vector.broadcast %3 : vector<1x32xf32> to vector<16x32xf32>
    %159 = arith.addf %157, %158 : vector<16x32xf32>
    %160 = arith.addf %111, %159 : vector<16x32xf32>
    %cst_61 = arith.constant dense<0.000000e+00> : vector<16xf32>
    %161 = vector.multi_reduction <add>, %160, %cst_61 [1] : vector<16x32xf32> to vector<16xf32>
    %162 = vector.shape_cast %161 : vector<16xf32> to vector<16x1xf32>
    %cst_62 = arith.constant 3.200000e+01 : f32
    %163 = vector.broadcast %cst_62 : f32 to vector<16x1xf32>
    %164 = arith.divf %162, %163 : vector<16x1xf32>
    %165 = vector.broadcast %164 : vector<16x1xf32> to vector<16x32xf32>
    %166 = arith.subf %160, %165 : vector<16x32xf32>
    %167 = arith.mulf %166, %166 : vector<16x32xf32>
    %cst_63 = arith.constant dense<0.000000e+00> : vector<16xf32>
    %168 = vector.multi_reduction <add>, %167, %cst_63 [1] : vector<16x32xf32> to vector<16xf32>
    %169 = vector.shape_cast %168 : vector<16xf32> to vector<16x1xf32>
    %cst_64 = arith.constant 3.200000e+01 : f32
    %170 = vector.broadcast %cst_64 : f32 to vector<16x1xf32>
    %171 = arith.divf %169, %170 : vector<16x1xf32>
    %172 = vector.broadcast %164 : vector<16x1xf32> to vector<16x32xf32>
    %173 = arith.subf %160, %172 : vector<16x32xf32>
    %cst_65 = arith.constant 9.99999996E-13 : f32
    %174 = vector.broadcast %cst_65 : f32 to vector<16x1xf32>
    %175 = arith.addf %171, %174 : vector<16x1xf32>
    %176 = math.rsqrt %175 : vector<16x1xf32>
    %177 = vector.broadcast %176 : vector<16x1xf32> to vector<16x32xf32>
    %178 = arith.mulf %173, %177 : vector<16x32xf32>
    %179 = vector.broadcast %9 : vector<1x32xf32> to vector<16x32xf32>
    %180 = arith.mulf %178, %179 : vector<16x32xf32>
    %181 = vector.broadcast %10 : vector<1x32xf32> to vector<16x32xf32>
    %182 = arith.addf %180, %181 : vector<16x32xf32>
    %cst_66 = arith.constant dense<0.000000e+00> : vector<2x32xf32>
    %183 = tpu.matmul %11, %182, %cst_66 {dimension_numbers = #tpu.dot_dimension_numbers<[1], [0], [0], [1], [0, 0, 1, 1], [], []>} : vector<2x16xf32>, vector<16x32xf32>, vector<2x32xf32> -> vector<2x32xf32>
    %c160 = arith.constant 160 : index
    %c0_67 = arith.constant 0 : index
    %184 = vector.load %arg3[%c160, %c0_67] : memref<256x128xf32, #tpu.memory_space<vmem>>, vector<32x128xf32>
    %cst_68 = arith.constant dense<0.000000e+00> : vector<2x128xf32>
    %185 = tpu.matmul %183, %184, %cst_68 {dimension_numbers = #tpu.dot_dimension_numbers<[1], [0], [0], [1], [0, 0, 1, 1], [], []>} : vector<2x32xf32>, vector<32x128xf32>, vector<2x128xf32> -> vector<2x128xf32>
    %186 = vector.broadcast %4 : vector<1x128xf32> to vector<2x128xf32>
    %187 = arith.addf %185, %186 : vector<2x128xf32>
    %c0_69 = arith.constant 0 : index
    %c0_70 = arith.constant 0 : index
    %188 = vector.load %arg5[%c0_69, %c0_70] : memref<2x128xf32, #tpu.memory_space<vmem>>, vector<2x128xf32>
    tpu.vector_store %arg5[%c0_69, %c0_70], %187 {strides = array<i32>} : memref<2x128xf32, #tpu.memory_space<vmem>>, vector<2x128xf32>,
    return
  }
  func.func @transform_0(%arg0: i32) -> (i32, i32) {
    %c0_i32 = arith.constant 0 : i32
    %c0_i32_0 = arith.constant 0 : i32
    %c0_i32_1 = arith.constant 0 : i32
    return %c0_i32, %c0_i32_0 : i32, i32
  }
  func.func @transform_1(%arg0: i32) -> (i32, i32) {
    %c0_i32 = arith.constant 0 : i32
    %c0_i32_0 = arith.constant 0 : i32
    %c0_i32_1 = arith.constant 0 : i32
    return %c0_i32, %c0_i32_0 : i32, i32
  }
  func.func @transform_2(%arg0: i32) -> (i32, i32) {
    %c0_i32 = arith.constant 0 : i32
    %c0_i32_0 = arith.constant 0 : i32
    %c0_i32_1 = arith.constant 0 : i32
    return %c0_i32, %c0_i32_0 : i32, i32
  }
  func.func @transform_3(%arg0: i32) -> (i32, i32) {
    %c0_i32 = arith.constant 0 : i32
    %c0_i32_0 = arith.constant 0 : i32
    %c0_i32_1 = arith.constant 0 : i32
    return %c0_i32, %c0_i32_0 : i32, i32
  }
  func.func @transform_4(%arg0: i32) -> (i32, i32) {
    %c0_i32 = arith.constant 0 : i32
    %c0_i32_0 = arith.constant 0 : i32
    %c0_i32_1 = arith.constant 0 : i32
    return %c0_i32, %c0_i32_0 : i32, i32
  }
}

</mosaic_0001>

<bundles_post_ra>
// kernel: binary_bert_classifier_forward.1
= control target key start
LH: loop header
LB: loop body
LE: loop exit
PB: predicated region body
PF: predicated region fallthrough
CT: control target
= control target key end

     0   :  { %9 = vsyncpa [#allocation3], 0  ;;  %s1669_s0 = inlined_call_operand.vmem [shape: s32[16,1], index: 0, kind: input, shape index: {}]   ;;  %s1670_s1 = inlined_call_operand.vmem [shape: s32[1,16], index: 1, kind: input, shape index: {}]   ;;  %s1671_s2 = inlined_call_operand.hbm [shape: f32[256,128], index: 2, kind: input, shape index: {}]   ;;  %s1672_s3 = inlined_call_operand.hbm [shape: f32[64,128], index: 3, kind: input, shape index: {}]   ;;  %s1673_s4 = inlined_call_operand.hbm [shape: f32[2,128], index: 4, kind: output, shape index: {}]  }
   0x1   :  { %10 = vsyncpa [#allocation6], 0 }
   0x2   :  { %11 = vsyncpa [#allocation4], 0  ;;  %s1514_s15 = smov [#allocation2]  }
   0x3   :  { %s21_s16 = sshll.u32 %s1514_s15, 4  ;;  %s22_s16 = int_to_ptr.vmem [resolvable:$true] %s21_s16 }
   0x4   :  { %s1456_s17 = scalar_lea.vmem %s22_s16, 4096  ;;  %p1461_p1 = scmp.lt.s32.totalorder %s22_s16, %s22_s16 }
   0x5   :  { %p1457_p0 = scmp.ne.s32.totalorder %s22_s16, %s1456_s17  ;;  %p1462_p2 = scmp.lt.s32.totalorder %s1456_s17, %s1456_s17 }
   0x7   :  { %p1463_p3 = por %p1462_p2, %p1461_p1 }
   0x9   :  { %p1464_p4 = pnand %p1463_p3, %p1457_p0 }
   0xb   :  { %1467 = shalt.err (!%p1464_p4)
}
   0xc   :  { %s1515_s18 = smov 128   ;;  %s1516_s19 = smov 8  }
   0xd   :  { %27 = dma.hbm_to_vmem [thread:$0]  %s1671_s2, 4096, %s22_s16, [#allocation3], %s1515_s18, %s1515_s18, %s1516_s19  }
   0xe   :  { %s1517_s22 = smov [#allocation5]  }
   0xf   :  { %s33_s23 = sshll.u32 %s1517_s22, 4  ;;  %s34_s23 = int_to_ptr.vmem [resolvable:$true] %s33_s23 }
  0x10   :  { %s1476_s24 = scalar_lea.vmem %s34_s23, 1024  ;;  %p1481_p6 = scmp.lt.s32.totalorder %s34_s23, %s34_s23 }
  0x11   :  { %p1477_p5 = scmp.ne.s32.totalorder %s34_s23, %s1476_s24  ;;  %p1482_p7 = scmp.lt.s32.totalorder %s1476_s24, %s1476_s24 }
  0x13   :  { %p1483_p8 = por %p1482_p7, %p1481_p6 }
  0x15   :  { %p1484_p9 = pnand %p1483_p8, %p1477_p5 }
  0x17   :  { %1487 = shalt.err (!%p1484_p9)
}
  0x18   :  { %39 = dma.hbm_to_vmem [thread:$0]  %s1672_s3, 1024, %s34_s23, [#allocation6], %s1515_s18, %s1515_s18, %s1516_s19  }
  0x19   :  { %1508 = dma.done.wait [#allocation3], 4096  }
  0x1a   :  { %1509 = vsyncadd [#allocation3], 4294963200 }
  0x1b   :  { %1510 = dma.done.wait [#allocation6], 1024  }
  0x1c   :  { %1511 = vsyncadd [#allocation6], 4294966272  ;;  %v1518_v0 = vmov 0   ;;  %v64_v1 = vld [vmem:[%s1669_s0] sm:$0xff]  ;;  %v87_v2 = vld [vmem:[#allocation2 + $0xf8] sm:$0xff]  ;;  %v66_v11 = vlaneseq  ;;  %vm88_vm0 = vcmask 523264  }
  0x1d   :  { %1411 = vset.pattern.permute.xlu0 %v1518_v0  ;;  %1282 = vmatprep.subr.mxu0 %v87_v2  ;;  %v86_v3 = vld [vmem:[#allocation2 + $0xf0] sm:$0xff]  ;;  %v65_v4 = vld [vmem:[%s1669_s0 + $0x8] sm:$0xff]  ;;  %v84_v6 = vld [vmem:[#allocation2 + $0xe0] sm:$0xff]  ;;  %v1519_v14 = vmov 0.0   ;;  %vm170_vm3 = vcmask 261120   ;;  %vm222_vm4 = vcmask 130048  }
  0x1e   :  { %69 = vperm.xlu0 %1411, %v64_v1   ;;  %1283 = vmatpush3.msra.mxu0 %v87_v2  ;;  %v85_v5 = vld [vmem:[#allocation2 + $0xe8] sm:$0xff]  ;;  %v83_v7 = vld [vmem:[#allocation2 + $0xd8] sm:$0xff]  ;;  %v82_v8 = vld [vmem:[#allocation2 + $0xd0] sm:$0xff]  ;;  %v67_v12 = vand.u32 127, %v66_v11  ;;  %s1520_s0 = smov 96   ;;  %s1521_s3 = smov 112  }
  0x1f   :  { %1284 = vmatprep.subr.mxu0 %v86_v3  ;;  %v81_v9 = vld [vmem:[#allocation2 + $0xc8] sm:$0xff]  ;;  %v80_v10 = vld [vmem:[#allocation2 + $0xc0] sm:$0xff]  ;;  %v58_v19 = vld [vmem:[#allocation5 + $0x10] sm:$0xff]  ;;  %v216_v0 = vshrl.u32 %v66_v11, 7  ;;  %s1522_s6 = smov 16   ;;  %vm1524_vm7 = vmmov 0  }
  0x20   :  { %1285 = vmatpush3.msra.mxu0 %v86_v3  ;;  %v59_v20 = vld [vmem:[#allocation5 + $0x18] sm:$0xff]  ;;  %v234_v37 = vld [vmem:[#allocation2 + $0x10] sm:$0xff]  ;;  %v233_v38 = vld [vmem:[#allocation2 + $0x8] sm:$0xff]  ;;  %s1525_s7 = smov [#allocation7]  }
  0x21   :  { %1286 = vmatprep.subr.mxu0 %v85_v5  ;;  %v235_v36 = vld [vmem:[#allocation2 + $0x18] sm:$0xff]  ;;  %v232_v39 = vld [vmem:[#allocation2] sm:$0xff]  ;;  %v217_v3 = vsub.s32 0, %v216_v0  ;;  %s1173_s8 = sshll.u32 %s1525_s7, 4  ;;  %s1174_s8 = int_to_ptr.vmem [resolvable:$true] %s1173_s8 }
  0x22   :  { %72 = vperm.xlu0 %1411, %v65_v4   ;;  %1287 = vmatpush3.msra.mxu0 %v85_v5  ;;  %v1187_v47 = vld [vmem:[#allocation5 + $0x5] ss:$0 sm:$0xff]  ;;  %v1188_v49 = vld [vmem:[#allocation5 + $0x6] ss:$0 sm:$0xff]  ;;  %v1189_v56 = vld [vmem:[#allocation5] ss:$0 sm:$0xff]  ;;  %p1493_p11 = scmp.lt.s32.totalorder %s1174_s8, %s1174_s8 }
  0x23   :  { %1288 = vmatprep.subr.mxu0 %v84_v6  ;;  %1301 = vmatprep.subr.mxu1 %v235_v36  ;;  %v210_v63 = vld [vmem:[%s1670_s1] sm:$0x1]  ;;  %s1523_s1 = smov 64   ;;  %s1488_s9 = scalar_lea.vmem %s1174_s8, 32 }
  0x24   :  { %1289 = vmatpush3.msra.mxu0 %v84_v6  ;;  %1302 = vmatpush3.msra.mxu1 %v235_v36  ;;  %v211_v1 = vcvt.s32.f32 %v210_v63  ;;  %p1489_p10 = scmp.ne.s32.totalorder %s1174_s8, %s1488_s9  ;;  %p1494_p12 = scmp.lt.s32.totalorder %s1488_s9, %s1488_s9 }
  0x25   :  { %1290 = vmatprep.subr.mxu0 %v83_v7  ;;  %1303 = vmatprep.subr.mxu1 %v234_v37 }
  0x26   :  { %1291 = vmatpush3.msra.mxu0 %v83_v7  ;;  %1304 = vmatpush3.msra.mxu1 %v234_v37  ;;  %v212_v2 = vsub.f32 1.0, %v211_v1  ;;  %p1495_p13 = por %p1494_p12, %p1493_p11 }
  0x27   :  { %1292 = vmatprep.subr.mxu0 %v82_v8  ;;  %1305 = vmatprep.subr.mxu1 %v233_v38 }
  0x28   :  { %1293 = vmatpush3.msra.mxu0 %v82_v8  ;;  %1306 = vmatpush3.msra.mxu1 %v233_v38  ;;  %v213_v4 = vmul.f32 -1e+09, %v212_v2  ;;  %p1496_p0 = pnand %p1495_p13, %p1489_p10 }
  0x29   :  { %1294 = vmatprep.subr.mxu0 %v81_v9  ;;  %1307 = vmatprep.subr.mxu1 %v232_v39 }
  0x2a   :  { %1295 = vmatpush3.msra.mxu0 %v81_v9  ;;  %1308 = vmatpush3.msra.mxu1 %v232_v39  ;;  %v218_v5 = vrot.slane %v213_v4, %v217_v3 }
  0x2b   :  { %1296 = vmatprep.subr.mxu0 %v80_v10 }
  0x2c   :  { %1297 = vmatpush3.msra.mxu0 %v80_v10 }
  0x99   :  { %v70_v13 = vpop.permute.xlu0 %69 }
  0x9a   :  { %vm74_vm1 = vcmp.eq.s32.totalorder %v67_v12, %v70_v13  ;;  %v61_v13 = vld [vmem:[#allocation5 + $0x28] sm:$0xff] }
  0x9b   :  { %v1183_v15 = vsel %vm74_vm1, 1.0, %v1519_v14 }
  0x9c   :  { %1298 = vmatprep.mubr.msk.f32.mxu0 %vm88_vm0, %v1183_v15  ;;  %v60_v15 = vld [vmem:[#allocation5 + $0x20] sm:$0xff] }
  0x9d   :  { %v73_v16 = vpop.permute.xlu0 %72 }
  0x9e   :  { %vm75_vm2 = vcmp.eq.s32.totalorder %v67_v12, %v73_v16 }
  0x9f   :  { %v1184_v17 = vsel %vm75_vm2, 1.0, %v1519_v14 }
  0xa0   :  { %1299 = vmatmul.mubr.msk.f32.vlgmr.msra.gmra.mxu0 %vm88_vm0, %v1184_v17 }
 0x160   :  { %v1300_v18 = vpop.f32.mrf.mxu0 }
 0x161   :  { %v167_v23 = vadd.f32 %v1300_v18, %v59_v20 }
 0x162   :  { %v161_v21 = vpop.f32.mrf.mxu0 }
 0x163   :  { %v162_v22 = vadd.f32 %v161_v21, %v58_v19  ;;  %v174_v25 = vsel %vm170_vm3, %v167_v23, 0.0 }
 0x165   :  { %v171_v24 = vsel %vm170_vm3, %v162_v22, 0.0 }
 0x166   :  { %172 = vadd.xlane.f32.xlu1 %v171_v24  ;;  %v62_v24 = vld [vmem:[#allocation5 + $0x30] sm:$0xff] }
 0x16a   :  { %175 = vadd.xlane.f32.xlu1 %v174_v25 }
 0x1ef   :  { %v173_v26 = vpop.xlane.xlu1 %172 }
 0x1f0   :  { %v178_v27 = vmul.f32 0.03125, %v173_v26 }
 0x1f2   :  { %v180_v28 = vsub.f32 %v162_v22, %v178_v27 }
 0x1f3   :  { %v176_v29 = vpop.xlane.xlu1 %175 }
 0x1f4   :  { %v179_v30 = vmul.f32 0.03125, %v176_v29  ;;  %v182_v31 = vmul.f32 %v180_v28, %v180_v28 }
 0x1f6   :  { %v181_v32 = vsub.f32 %v167_v23, %v179_v30  ;;  %v184_v33 = vsel %vm170_vm3, %v182_v31, 0.0 }
 0x1f7   :  { %185 = vadd.xlane.f32.xlu0 %v184_v33 }
 0x1f8   :  { %v183_v34 = vmul.f32 %v181_v32, %v181_v32 }
 0x1fa   :  { %v187_v35 = vsel %vm170_vm3, %v183_v34, 0.0 }
 0x1fb   :  { %188 = vadd.xlane.f32.xlu1 %v187_v35 }
 0x280   :  { %v186_v40 = vpop.xlane.xlu0 %185 }
 0x281   :  { %v190_v41 = vmul.f32 0.03125, %v186_v40 }
 0x283   :  { %v192_v42 = vadd.f32 1e-12, %v190_v41 }
 0x284   :  { %v189_v43 = vpop.xlane.xlu1 %188 }
 0x285   :  { %1412 = vrsqrt.f32 %v192_v42  ;;  %v191_v44 = vmul.f32 0.03125, %v189_v43 }
 0x287   :  { %v193_v45 = vadd.f32 1e-12, %v191_v44 }
 0x289   :  { %1414 = vrsqrt.f32 %v193_v45 }
 0x292   :  { %v1413_v46 = vpop.eup %1412 }
 0x293   :  { %v196_v48 = vmul.f32 %v1413_v46, %v180_v28  ;;  %v63_v28 = vld [vmem:[#allocation5 + $0x38] sm:$0xff] }
 0x295   :  { %v202_v50 = vmul.f32 %v1187_v47, %v196_v48 }
 0x296   :  { %v1415_v51 = vpop.eup %1414 }
 0x297   :  { %v197_v52 = vmul.f32 %v1415_v51, %v181_v32  ;;  %v1572_v53 = vadd.f32 %v1188_v49, %v202_v50 }
 0x299   :  { %v203_v54 = vmul.f32 %v1187_v47, %v197_v52  ;;  %1309 = vmatprep.mubr.msk.f32.mxu1 %vm170_vm3, %v1572_v53 }
 0x29b   :  { %v1576_v55 = vadd.f32 %v1188_v49, %v203_v54 }
 0x29d   :  { %1310 = vmatmul.mubr.msk.f32.vlgmr.msra.gmra.mxu1 %vm170_vm3, %v1576_v55 }
 0x35d   :  { %v1311_v57 = vpop.f32.mrf.mxu1 }
 0x35e   :  { %v1580_v58 = vadd.f32 %v1311_v57, %v1189_v56 }
 0x35f   :  { %v312_v59 = vpop.f32.mrf.mxu1 }
 0x360   :  { %v1582_v60 = vadd.f32 %v1189_v56, %v312_v59  ;;  %329 = vrot.lane.b32.xlu0 %v1580_v58, %s1520_s0  ;;  %325 = vrot.lane.b32.xlu1 %v1580_v58, %s1521_s3 }
 0x362   :  { %1320 = vmatprep.mubr.msk.f32.mxu1 %vm222_vm4, %v1582_v60 }
 0x364   :  { %323 = vrot.lane.b32.xlu1 %v1582_v60, %s1521_s3 }
 0x3d2   :  { %v326_v61 = vpop.permute.xlu1 %325  ;;  %v330_v8 = vpop.permute.xlu0 %329 }
 0x3d3   :  { %333 = vrot.lane.b32.xlu1 %v326_v61, %s1520_s0 }
 0x3d6   :  { %v324_v62 = vpop.permute.xlu1 %323 }
 0x3d7   :  { %331 = vrot.lane.b32.xlu1 %v324_v62, %s1520_s0 }
 0x3db   :  { %327 = vrot.lane.b32.xlu1 %v1582_v60, %s1520_s0 }
 0x3df   :  { %219 = vrot.lane.b32.xlu1 %v218_v5, %s1522_s6 }
 0x445   :  { %v334_v6 = vpop.permute.xlu1 %333 }
 0x446   :  { %1312 = vmatprep.subr.msk.mxu1 %vm222_vm4, %v334_v6 }
 0x447   :  { %1313 = vmatpush3.xpose.msk.msra.mxu1 %vm222_vm4, %v334_v6 }
 0x449   :  { %v332_v7 = vpop.permute.xlu1 %331 }
 0x44a   :  { %1314 = vmatprep.subr.msk.mxu1 %vm222_vm4, %v332_v7 }
 0x44b   :  { %1315 = vmatpush3.xpose.msk.msra.mxu1 %vm222_vm4, %v332_v7 }
 0x44c   :  { %1316 = vmatprep.subr.msk.mxu1 %vm222_vm4, %v330_v8 }
 0x44d   :  { %v328_v9 = vpop.permute.xlu1 %327 }
 0x44f   :  { %1317 = vmatpush3.xpose.msk.msra.mxu1 %vm222_vm4, %v330_v8 }
 0x450   :  { %1318 = vmatprep.subr.msk.mxu1 %vm222_vm4, %v328_v9 }
 0x451   :  { %v220_v10 = vpop.permute.xlu1 %219 }
 0x452   :  { %v223_v11 = vsel %vm222_vm4, %v213_v4, %v220_v10 }
 0x453   :  { %1319 = vmatpush3.xpose.msk.msra.mxu1 %vm222_vm4, %v328_v9  ;;  %v227_v12 = vrot.slane %v223_v11, %v217_v3 }
 0x455   :  { %v229_v16 = vadd.f32 %v227_v12, %v61_v13  ;;  %v228_v19 = vadd.f32 %v227_v12, %v60_v15  ;;  %v230_v32 = vadd.f32 %v227_v12, %v62_v24  ;;  %v231_v34 = vadd.f32 %v227_v12, %v63_v28  ;;  %v610_v12 = vld [vmem:[#allocation2 + $0x38] sm:$0xff]  ;;  %v609_v13 = vld [vmem:[#allocation2 + $0x30] sm:$0xff]  ;;  %v608_v15 = vld [vmem:[#allocation2 + $0x28] sm:$0xff] }
 0x456   :  { %1321 = vmatmul.mubr.msk.f32.vlgmr.msra.gmra.mxu1 %vm222_vm4, %v1580_v58 }
 0x457   :  { %1323 = vmatprep.mubr.msk.f32.mxu1 %vm222_vm4, %v324_v62 }
 0x45a   :  { %1324 = vmatmul.mubr.msk.f32.gmra.mxu1 %vm222_vm4, %v326_v61 }
 0x516   :  { %v1322_v17 = vpop.f32.mrf.mxu1 }
 0x517   :  { %v437_v18 = vmul.f32 0.25, %v1322_v17 }
 0x518   :  { %v417_v20 = vpop.f32.mrf.mxu1 }
 0x519   :  { %v436_v21 = vmul.f32 0.25, %v417_v20  ;;  %v441_v22 = vadd.f32 %v437_v18, %v229_v16  ;;  %v607_v16 = vld [vmem:[#allocation2 + $0x20] sm:$0xff] }
 0x51a   :  { %v1325_v23 = vpop.f32.mrf.mxu1 }
 0x51b   :  { %v447_v25 = vsel %vm170_vm3, %v441_v22, -inf  ;;  %v440_v26 = vadd.f32 %v436_v21, %v228_v19  ;;  %v439_v29 = vmul.f32 0.25, %v1325_v23 }
 0x51c   :  { %448 = vmax.xlane.f32.xlu0 %v447_v25  ;;  %v427_v27 = vpop.f32.mrf.mxu1  ;;  %v1204_v25 = vld [vmem:[#allocation5 + $0x1] ss:$0 sm:$0xff] }
 0x51d   :  { %v438_v30 = vmul.f32 0.25, %v427_v27  ;;  %v444_v31 = vsel %vm170_vm3, %v440_v26, -inf  ;;  %v443_v36 = vadd.f32 %v439_v29, %v231_v34 }
 0x51e   :  { %445 = vmax.xlane.f32.xlu1 %v444_v31 }
 0x51f   :  { %v442_v33 = vadd.f32 %v438_v30, %v230_v32  ;;  %v453_v37 = vsel %vm170_vm3, %v443_v36, -inf }
 0x521   :  { %v450_v35 = vsel %vm170_vm3, %v442_v33, -inf }
 0x522   :  { %451 = vmax.xlane.f32.xlu1 %v450_v35 }
 0x526   :  { %454 = vmax.xlane.f32.xlu1 %v453_v37 }
 0x532   :  { %494 = vrot.lane.b32.xlu0 %v326_v61, %s1523_s1 }
 0x537   :  { %492 = vrot.lane.b32.xlu1 %v324_v62, %s1523_s1 }
 0x5a5   :  { %v449_v38 = vpop.xlane.xlu0 %448 }
 0x5a6   :  { %v457_v39 = vsub.f32 %v441_v22, %v449_v38 }
 0x5a7   :  { %v446_v40 = vpop.xlane.xlu1 %445 }
 0x5a8   :  { %v462_v41 = vmul.f32 1.442695, %v457_v39  ;;  %v456_v42 = vsub.f32 %v440_v26, %v446_v40 }
 0x5a9   :  { %v495_v43 = vpop.permute.xlu0 %494 }
 0x5aa   :  { %1416 = vpow2.f32 %v462_v41  ;;  %v460_v44 = vmul.f32 1.442695, %v456_v42  ;;  %1326 = vmatprep.subr.mxu0 %v495_v43 }
 0x5ab   :  { %1327 = vmatpush3.msra.mxu0 %v495_v43  ;;  %v452_v45 = vpop.xlane.xlu1 %451  ;;  %v739_v43 = vld [vmem:[#allocation2 + $0x58] sm:$0xff] }
 0x5ac   :  { %1418 = vpow2.f32 %v460_v44  ;;  %v458_v46 = vsub.f32 %v442_v33, %v452_v45  ;;  %1351 = vmatprep.subr.mxu1 %v739_v43  ;;  %v737_v44 = vld [vmem:[#allocation2 + $0x48] sm:$0xff]  ;;  %v736_v45 = vld [vmem:[#allocation2 + $0x40] sm:$0xff] }
 0x5ad   :  { %1352 = vmatpush3.msra.mxu1 %v739_v43 }
 0x5ae   :  { %v464_v47 = vmul.f32 1.442695, %v458_v46 }
 0x5af   :  { %v455_v48 = vpop.xlane.xlu1 %454 }
 0x5b0   :  { %1420 = vpow2.f32 %v464_v47  ;;  %v459_v49 = vsub.f32 %v443_v36, %v455_v48 }
 0x5b2   :  { %v466_v50 = vmul.f32 1.442695, %v459_v49 }
 0x5b3   :  { %v493_v51 = vpop.permute.xlu1 %492 }
 0x5b4   :  { %1422 = vpow2.f32 %v466_v50  ;;  %1328 = vmatprep.subr.mxu0 %v493_v51 }
 0x5b5   :  { %1329 = vmatpush3.msra.mxu0 %v493_v51 }
 0x5b7   :  { %v1417_v52 = vpop.eup %1416 }
 0x5b8   :  { %v471_v54 = vsel %vm170_vm3, %v1417_v52, 0.0 }
 0x5b9   :  { %v1419_v56 = vpop.eup %1418  ;;  %472 = vadd.xlane.f32.xlu1 %v471_v54  ;;  %v1207_v54 = vld [vmem:[#allocation5 + $0x7] ss:$0 sm:$0xff] }
 0x5ba   :  { %v468_v57 = vsel %vm170_vm3, %v1419_v56, 0.0 }
 0x5bb   :  { %469 = vadd.xlane.f32.xlu0 %v468_v57 }
 0x5bd   :  { %v1421_v59 = vpop.eup %1420 }
 0x5be   :  { %v474_v61 = vsel %vm170_vm3, %v1421_v59, 0.0 }
 0x5bf   :  { %475 = vadd.xlane.f32.xlu0 %v474_v61 }
 0x5c1   :  { %v1423_v62 = vpop.eup %1422 }
 0x5c2   :  { %v477_v63 = vsel %vm170_vm3, %v1423_v62, 0.0 }
 0x5c3   :  { %478 = vadd.xlane.f32.xlu1 %v477_v63 }
 0x5d4   :  { %490 = vrot.lane.b32.xlu1 %v1580_v58, %s1523_s1 }
 0x5d5   :  { %488 = vrot.lane.b32.xlu0 %v1582_v60, %s1523_s1 }
 0x642   :  { %v473_v0 = vpop.xlane.xlu1 %472 }
 0x643   :  { %1424 = vrcp.f32 %v473_v0 }
 0x644   :  { %v470_v1 = vpop.xlane.xlu0 %469 }
 0x645   :  { %1426 = vrcp.f32 %v470_v1 }
 0x648   :  { %v476_v2 = vpop.xlane.xlu0 %475 }
 0x649   :  { %1428 = vrcp.f32 %v476_v2  ;;  %v886_v2 = vld [vmem:[#allocation2 + $0x98] sm:$0xff] }
 0x64c   :  { %v479_v3 = vpop.xlane.xlu1 %478  ;;  %v489_v7 = vpop.permute.xlu0 %488 }
 0x64d   :  { %1430 = vrcp.f32 %v479_v3  ;;  %v885_v3 = vld [vmem:[#allocation2 + $0x90] sm:$0xff] }
 0x650   :  { %v491_v4 = vpop.permute.xlu1 %490  ;;  %v1425_v5 = vpop.eup %1424 }
 0x651   :  { %1330 = vmatprep.subr.mxu0 %v491_v4  ;;  %v485_v58 = vmul.f32 %v1425_v5, %v1417_v52  ;;  %v883_v5 = vld [vmem:[#allocation2 + $0x80] sm:$0xff] }
 0x652   :  { %v1427_v6 = vpop.eup %1426  ;;  %1331 = vmatpush3.msra.mxu0 %v491_v4  ;;  %v884_v4 = vld [vmem:[#allocation2 + $0x88] sm:$0xff] }
 0x653   :  { %1332 = vmatprep.subr.mxu0 %v489_v7  ;;  %v484_v8 = vmul.f32 %v1427_v6, %v1419_v56  ;;  %v882_v6 = vld [vmem:[#allocation2 + $0x78] sm:$0xff] }
 0x654   :  { %1333 = vmatpush3.msra.mxu0 %v489_v7  ;;  %v881_v7 = vld [vmem:[#allocation2 + $0x70] sm:$0xff] }
 0x655   :  { %1334 = vmatprep.mubr.msk.f32.mxu0 %vm170_vm3, %v484_v8  ;;  %1340 = vmatprep.subr.mxu0 %v610_v12  ;;  %v880_v8 = vld [vmem:[#allocation2 + $0x68] sm:$0xff] }
 0x656   :  { %v1429_v60 = vpop.eup %1428  ;;  %1335 = vmatmul.mubr.msk.f32.vlgmr.msra.gmra.mxu0 %vm170_vm3, %v485_v58  ;;  %v879_v58 = vld [vmem:[#allocation2 + $0x60] sm:$0xff] }
 0x657   :  { %v486_v9 = vmul.f32 %v1429_v60, %v1421_v59  ;;  %1341 = vmatpush3.msra.mxu0 %v610_v12  ;;  %v1209_v60 = vld [vmem:[#allocation5 + $0x2] ss:$0 sm:$0xff] }
 0x658   :  { %1342 = vmatprep.subr.mxu0 %v609_v13 }
 0x659   :  { %1337 = vmatprep.mubr.msk.f32.mxu0 %vm170_vm3, %v486_v9  ;;  %1343 = vmatpush3.msra.mxu0 %v609_v13 }
 0x65a   :  { %v1431_v10 = vpop.eup %1430  ;;  %1344 = vmatprep.subr.mxu0 %v608_v15 }
 0x65b   :  { %v487_v11 = vmul.f32 %v1431_v10, %v1423_v62  ;;  %1345 = vmatpush3.msra.mxu0 %v608_v15  ;;  %v1208_v62 = vld [vmem:[#allocation5 + $0x8] ss:$0 sm:$0xff] }
 0x65c   :  { %1346 = vmatprep.subr.mxu0 %v607_v16 }
 0x65d   :  { %1338 = vmatmul.mubr.msk.f32.gmra.mxu0 %vm170_vm3, %v487_v11 }
 0x65e   :  { %1347 = vmatpush3.msra.mxu0 %v607_v16 }
 0x65f   :  { %1362 = vmatprep.subr.mxu0 %v886_v2 }
 0x716   :  { %v1336_v17 = vpop.f32.mrf.mxu0 }
 0x718   :  { %v578_v18 = vpop.f32.mrf.mxu0 }
 0x71d   :  { %v1339_v19 = vpop.f32.mrf.mxu0 }
 0x71e   :  { %601 = vrot.lane.b32.xlu0 %v1339_v19, %s1522_s6 }
 0x71f   :  { %v588_v20 = vpop.f32.mrf.mxu0 }
 0x720   :  { %599 = vrot.lane.b32.xlu1 %v588_v20, %s1522_s6 }
 0x790   :  { %v602_v21 = vpop.permute.xlu0 %601 }
 0x791   :  { %v606_v24 = vsel %vm222_vm4, %v1336_v17, %v602_v21 }
 0x792   :  { %v600_v22 = vpop.permute.xlu1 %599 }
 0x793   :  { %v605_v23 = vsel %vm222_vm4, %v578_v18, %v600_v22 }
 0x794   :  { %1348 = vmatprep.mubr.msk.f32.mxu0 %vm170_vm3, %v605_v23 }
 0x795   :  { %1349 = vmatmul.mubr.msk.f32.vlgmr.msra.gmra.mxu0 %vm170_vm3, %v606_v24 }
 0x796   :  { %1363 = vmatpush3.msra.mxu0 %v886_v2 }
 0x797   :  { %1364 = vmatprep.subr.mxu0 %v885_v3 }
 0x798   :  { %1365 = vmatpush3.msra.mxu0 %v885_v3 }
 0x799   :  { %1366 = vmatprep.subr.mxu0 %v884_v4 }
 0x79a   :  { %1367 = vmatpush3.msra.mxu0 %v884_v4  ;;  %v1212_v4 = vld [vmem:[#allocation5 + $0x3] ss:$0 sm:$0xff] }
 0x79b   :  { %1368 = vmatprep.subr.mxu0 %v883_v5 }
 0x79c   :  { %1369 = vmatpush3.msra.mxu0 %v883_v5 }
 0x79d   :  { %1370 = vmatprep.subr.mxu0 %v882_v6 }
 0x79e   :  { %1371 = vmatpush3.msra.mxu0 %v882_v6 }
 0x79f   :  { %1372 = vmatprep.subr.mxu0 %v881_v7 }
 0x7a0   :  { %1373 = vmatpush3.msra.mxu0 %v881_v7 }
 0x7a1   :  { %1374 = vmatprep.subr.mxu0 %v880_v8 }
 0x7a2   :  { %1375 = vmatpush3.msra.mxu0 %v880_v8 }
 0x7a3   :  { %1376 = vmatprep.subr.mxu0 %v879_v58 }
 0x7a4   :  { %1377 = vmatpush3.msra.mxu0 %v879_v58 }
 0x855   :  { %v1350_v26 = vpop.f32.mrf.mxu0 }
 0x856   :  { %v693_v27 = vadd.f32 %v1350_v26, %v1204_v25 }
 0x857   :  { %v687_v28 = vpop.f32.mrf.mxu0 }
 0x858   :  { %v688_v29 = vadd.f32 %v1204_v25, %v687_v28  ;;  %v697_v30 = vadd.f32 %v693_v27, %v1576_v55 }
 0x85a   :  { %v701_v31 = vsel %vm170_vm3, %v697_v30, 0.0  ;;  %v696_v32 = vadd.f32 %v688_v29, %v1572_v53  ;;  %v738_v53 = vld [vmem:[#allocation2 + $0x50] sm:$0xff] }
 0x85b   :  { %702 = vadd.xlane.f32.xlu0 %v701_v31  ;;  %1353 = vmatprep.subr.mxu1 %v738_v53 }
 0x85c   :  { %v698_v33 = vsel %vm170_vm3, %v696_v32, 0.0  ;;  %1354 = vmatpush3.msra.mxu1 %v738_v53 }
 0x85d   :  { %699 = vadd.xlane.f32.xlu1 %v698_v33  ;;  %1355 = vmatprep.subr.mxu1 %v737_v44 }
 0x85e   :  { %1356 = vmatpush3.msra.mxu1 %v737_v44 }
 0x85f   :  { %1357 = vmatprep.subr.mxu1 %v736_v45 }
 0x860   :  { %1358 = vmatpush3.msra.mxu1 %v736_v45 }
 0x861   :  { %1381 = vmatprep.subr.mxu1 %v1519_v14 }
 0x8e4   :  { %v703_v34 = vpop.xlane.xlu0 %702 }
 0x8e5   :  { %v705_v35 = vmul.f32 0.03125, %v703_v34 }
 0x8e6   :  { %v700_v36 = vpop.xlane.xlu1 %699 }
 0x8e7   :  { %v707_v37 = vsub.f32 %v697_v30, %v705_v35  ;;  %v704_v38 = vmul.f32 0.03125, %v700_v36 }
 0x8e9   :  { %v706_v39 = vsub.f32 %v696_v32, %v704_v38  ;;  %v709_v40 = vmul.f32 %v707_v37, %v707_v37 }
 0x8eb   :  { %v713_v41 = vsel %vm170_vm3, %v709_v40, 0.0  ;;  %v708_v42 = vmul.f32 %v706_v39, %v706_v39 }
 0x8ec   :  { %714 = vadd.xlane.f32.xlu1 %v713_v41 }
 0x8ed   :  { %v710_v55 = vsel %vm170_vm3, %v708_v42, 0.0 }
 0x8ee   :  { %711 = vadd.xlane.f32.xlu0 %v710_v55 }
 0x975   :  { %v715_v46 = vpop.xlane.xlu1 %714 }
 0x976   :  { %v717_v47 = vmul.f32 0.03125, %v715_v46 }
 0x977   :  { %v712_v48 = vpop.xlane.xlu0 %711 }
 0x978   :  { %v719_v49 = vadd.f32 1e-12, %v717_v47  ;;  %v716_v50 = vmul.f32 0.03125, %v712_v48 }
 0x97a   :  { %1432 = vrsqrt.f32 %v719_v49  ;;  %v718_v51 = vadd.f32 1e-12, %v716_v50 }
 0x97c   :  { %1434 = vrsqrt.f32 %v718_v51 }
 0x987   :  { %v1433_v52 = vpop.eup %1432 }
 0x988   :  { %v723_v56 = vmul.f32 %v1433_v52, %v707_v37 }
 0x989   :  { %v1435_v57 = vpop.eup %1434 }
 0x98a   :  { %v722_v59 = vmul.f32 %v1435_v57, %v706_v39  ;;  %v729_v61 = vmul.f32 %v1207_v54, %v723_v56 }
 0x98c   :  { %v728_v63 = vmul.f32 %v1207_v54, %v722_v59  ;;  %v1641_v1 = vadd.f32 %v1208_v62, %v729_v61 }
 0x98e   :  { %v1639_v0 = vadd.f32 %v1208_v62, %v728_v63 }
 0x990   :  { %1359 = vmatprep.mubr.msk.f32.mxu1 %vm170_vm3, %v1639_v0 }
 0x991   :  { %1360 = vmatmul.mubr.msk.f32.vlgmr.msra.gmra.mxu1 %vm170_vm3, %v1641_v1 }
 0x992   :  { %1385 = vmatprep.mubr.msk.f32.mxu1 %vm1524_vm7, %v1519_v14 }
 0xa51   :  { %v1361_v9 = vpop.f32.mrf.mxu1 }
 0xa52   :  { %v822_v10 = vadd.f32 %v1361_v9, %v1209_v60 }
 0xa53   :  { %v816_v11 = vpop.f32.mrf.mxu1 }
 0xa54   :  { %v828_v12 = vmul.f32 0.70710677, %v822_v10  ;;  %v817_v13 = vadd.f32 %v1209_v60, %v816_v11  ;;  %v826_v63 = vmul.f32 0.5, %v822_v10 }
 0xa56   :  { %v830_v15 = vand.u32 2147483647, %v828_v12  ;;  %v827_v16 = vmul.f32 0.70710677, %v817_v13  ;;  %vm870_vm5 = vcmp.lt.f32.partialorder %v828_v12, 0.0  ;;  %v825_v61 = vmul.f32 0.5, %v817_v13 }
 0xa58   :  { %v832_v17 = vmul.f32 0.3275911, %v830_v15  ;;  %v829_v18 = vand.u32 2147483647, %v827_v16  ;;  %v858_v22 = vsub.f32 0.0, %v830_v15  ;;  %vm869_vm6 = vcmp.lt.f32.partialorder %v827_v16, 0.0 }
 0xa5a   :  { %v834_v19 = vadd.f32 1.0, %v832_v17  ;;  %v831_v20 = vmul.f32 0.3275911, %v829_v18  ;;  %v857_v23 = vsub.f32 0.0, %v829_v18  ;;  %v860_v24 = vmul.f32 %v858_v22, %v830_v15 }
 0xa5c   :  { %1436 = vrcp.f32 %v834_v19  ;;  %v833_v21 = vadd.f32 1.0, %v831_v20  ;;  %v859_v26 = vmul.f32 %v857_v23, %v829_v18  ;;  %v863_v28 = vmul.f32 1.442695, %v860_v24 }
 0xa5e   :  { %1438 = vrcp.f32 %v833_v21  ;;  %v861_v32 = vmul.f32 1.442695, %v859_v26 }
 0xa5f   :  { %1440 = vpow2.f32 %v863_v28 }
 0xa60   :  { %1442 = vpow2.f32 %v861_v32 }
 0xa69   :  { %v1437_v25 = vpop.eup %1436 }
 0xa6a   :  { %v840_v27 = vmul.f32 1.0614054, %v1437_v25 }
 0xa6b   :  { %v1439_v29 = vpop.eup %1438 }
 0xa6c   :  { %v842_v30 = vadd.f32 -1.4531521, %v840_v27  ;;  %v839_v31 = vmul.f32 1.0614054, %v1439_v29  ;;  %v1441_v44 = vpop.eup %1440  ;;  %v1215_v27 = vld [vmem:[#allocation5 + $0x9] ss:$0 sm:$0xff] }
 0xa6d   :  { %v1443_v48 = vpop.eup %1442 }
 0xa6e   :  { %v844_v33 = vmul.f32 %v1437_v25, %v842_v30  ;;  %v841_v34 = vadd.f32 -1.4531521, %v839_v31  ;;  %v1216_v30 = vld [vmem:[#allocation5 + $0xa] ss:$0 sm:$0xff] }
 0xa70   :  { %v846_v35 = vadd.f32 1.4214138, %v844_v33  ;;  %v843_v36 = vmul.f32 %v1439_v29, %v841_v34 }
 0xa72   :  { %v848_v37 = vmul.f32 %v1437_v25, %v846_v35  ;;  %v845_v38 = vadd.f32 1.4214138, %v843_v36  ;;  %v57_v36 = vld [vmem:[#allocation5 + $0xb] sm:$0x3] }
 0xa74   :  { %v850_v39 = vadd.f32 -0.28449672, %v848_v37  ;;  %v847_v40 = vmul.f32 %v1439_v29, %v845_v38  ;;  %v1088_v37 = vld [vmem:[#allocation2 + $0xb8] sm:$0xff]  ;;  %v1087_v38 = vld [vmem:[#allocation2 + $0xb0] sm:$0xff] }
 0xa76   :  { %v852_v41 = vmul.f32 %v1437_v25, %v850_v39  ;;  %v849_v42 = vadd.f32 -0.28449672, %v847_v40  ;;  %v1086_v39 = vld [vmem:[#allocation2 + $0xa8] sm:$0xff]  ;;  %v1085_v40 = vld [vmem:[#allocation2 + $0xa0] sm:$0xff] }
 0xa78   :  { %v854_v55 = vadd.f32 0.2548296, %v852_v41  ;;  %v851_v43 = vmul.f32 %v1439_v29, %v849_v42 }
 0xa7a   :  { %v856_v53 = vmul.f32 %v1437_v25, %v854_v55  ;;  %v853_v45 = vadd.f32 0.2548296, %v851_v43  ;;  %v1218_v55 = vld [vmem:[#allocation5 + $0x4] ss:$0 sm:$0xff] }
 0xa7c   :  { %v866_v46 = vmul.f32 %v1441_v44, %v856_v53  ;;  %v855_v47 = vmul.f32 %v1439_v29, %v853_v45 }
 0xa7e   :  { %v868_v49 = vsub.f32 1.0, %v866_v46  ;;  %v865_v50 = vmul.f32 %v1443_v48, %v855_v47 }
 0xa80   :  { %v872_v51 = vsub.f32 0.0, %v868_v49  ;;  %v867_v52 = vsub.f32 1.0, %v865_v50 }
 0xa82   :  { %v874_v54 = vsel %vm870_vm5, %v872_v51, %v868_v49  ;;  %v871_v56 = vsub.f32 0.0, %v867_v52 }
 0xa83   :  { %v876_v57 = vadd.f32 1.0, %v874_v54 }
 0xa84   :  { %v873_v59 = vsel %vm869_vm6, %v871_v56, %v867_v52 }
 0xa85   :  { %v875_v62 = vadd.f32 1.0, %v873_v59  ;;  %v878_v3 = vmul.f32 %v876_v57, %v826_v63 }
 0xa87   :  { %v877_v2 = vmul.f32 %v875_v62, %v825_v61 }
 0xa89   :  { %1378 = vmatprep.mubr.msk.f32.mxu0 %vm88_vm0, %v877_v2 }
 0xa8a   :  { %1379 = vmatmul.mubr.msk.f32.vlgmr.msra.gmra.mxu0 %vm88_vm0, %v878_v3 }
 0xb4a   :  { %v1380_v5 = vpop.f32.mrf.mxu0 }
 0xb4b   :  { %v969_v6 = vadd.f32 %v1380_v5, %v1212_v4 }
 0xb4c   :  { %v963_v7 = vpop.f32.mrf.mxu0 }
 0xb4d   :  { %v964_v8 = vadd.f32 %v1212_v4, %v963_v7  ;;  %v973_v58 = vadd.f32 %v969_v6, %v1641_v1 }
 0xb4f   :  { %v977_v60 = vsel %vm170_vm3, %v973_v58, 0.0  ;;  %v972_v9 = vadd.f32 %v964_v8, %v1639_v0 }
 0xb50   :  { %978 = vadd.xlane.f32.xlu0 %v977_v60 }
 0xb51   :  { %v974_v10 = vsel %vm170_vm3, %v972_v9, 0.0 }
 0xb52   :  { %975 = vadd.xlane.f32.xlu1 %v974_v10 }
 0xbd9   :  { %v979_v11 = vpop.xlane.xlu0 %978 }
 0xbda   :  { %v981_v12 = vmul.f32 0.03125, %v979_v11 }
 0xbdb   :  { %v976_v13 = vpop.xlane.xlu1 %975 }
 0xbdc   :  { %v983_v15 = vsub.f32 %v973_v58, %v981_v12  ;;  %v980_v16 = vmul.f32 0.03125, %v976_v13 }
 0xbde   :  { %v982_v17 = vsub.f32 %v972_v9, %v980_v16  ;;  %v985_v18 = vmul.f32 %v983_v15, %v983_v15 }
 0xbe0   :  { %v989_v19 = vsel %vm170_vm3, %v985_v18, 0.0  ;;  %v984_v20 = vmul.f32 %v982_v17, %v982_v17 }
 0xbe1   :  { %990 = vadd.xlane.f32.xlu0 %v989_v19 }
 0xbe2   :  { %v986_v1 = vsel %vm170_vm3, %v984_v20, 0.0 }
 0xbe3   :  { %987 = vadd.xlane.f32.xlu1 %v986_v1 }
 0xc6a   :  { %v991_v0 = vpop.xlane.xlu0 %990 }
 0xc6b   :  { %v993_v21 = vmul.f32 0.03125, %v991_v0 }
 0xc6c   :  { %v988_v22 = vpop.xlane.xlu1 %987 }
 0xc6d   :  { %v995_v23 = vadd.f32 1e-12, %v993_v21  ;;  %v992_v24 = vmul.f32 0.03125, %v988_v22 }
 0xc6f   :  { %1444 = vrsqrt.f32 %v995_v23  ;;  %v994_v25 = vadd.f32 1e-12, %v992_v24 }
 0xc71   :  { %1446 = vrsqrt.f32 %v994_v25 }
 0xc7c   :  { %v1445_v26 = vpop.eup %1444 }
 0xc7d   :  { %v999_v28 = vmul.f32 %v1445_v26, %v983_v15 }
 0xc7e   :  { %v1447_v29 = vpop.eup %1446 }
 0xc7f   :  { %v1005_v31 = vmul.f32 %v1215_v27, %v999_v28  ;;  %v998_v32 = vmul.f32 %v1447_v29, %v982_v17 }
 0xc81   :  { %v1011_v33 = vadd.f32 %v1216_v30, %v1005_v31  ;;  %v1004_v34 = vmul.f32 %v1215_v27, %v998_v32 }
 0xc83   :  { %1382 = vmatpush3.msra.mxu1 %v1011_v33  ;;  %v1010_v35 = vadd.f32 %v1216_v30, %v1004_v34 }
 0xc84   :  { %1383 = vmatprep.subr.mxu1 %v1519_v14 }
 0xc85   :  { %1384 = vmatpush3.msra.mxu1 %v1010_v35 }
 0xc86   :  { %1386 = vmatmul.mubr.msk.f32.vlgmr.msra.gmra.mxu1 %vm222_vm4, %v57_v36  ;;  %1388 = vmatprep.subr.mxu1 %v1519_v14 }
 0xc87   :  { %1389 = vmatpush3.msra.mxu1 %v1088_v37  ;;  %1396 = vmatprep.mubr.msk.f32.mxu1 %vm1524_vm7, %v1519_v14 }
 0xc88   :  { %1390 = vmatprep.subr.mxu1 %v1519_v14 }
 0xc89   :  { %1391 = vmatpush3.msra.mxu1 %v1087_v38 }
 0xc8a   :  { %1392 = vmatprep.subr.mxu1 %v1519_v14 }
 0xc8b   :  { %1393 = vmatpush3.msra.mxu1 %v1086_v39 }
 0xc8c   :  { %1394 = vmatprep.subr.mxu1 %v1519_v14 }
 0xc8d   :  { %1395 = vmatpush3.msra.mxu1 %v1085_v40 }
 0xd46   :  { %v1081_v41 = vpop.f32.mrf.mxu1 }
 0xd47   :  { %1397 = vmatmul.mubr.msk.f32.vlgmr.msra.gmra.mxu1 %vm170_vm3, %v1081_v41 }
 0xd48   :  { %v1387_v42 = vpop.f32.mrf.mxu1 }
 0xe07   :  { %v1162_v43 = vpop.f32.mrf.mxu1 }
 0xe08   :  { %v1163_v53 = vadd.f32 %v1218_v55, %v1162_v43 }
 0xe09   :  { %v1398_v44 = vpop.f32.mrf.mxu1 }
 0xe0a   :  { %1166 = vst [vmem:[#allocation7] sm:$0x3] %v1163_v53 }
 0xe0b   :  { %1499 = shalt.err (!%p1496_p0)
}
 0xe0c   :  { %1176 = dma.vmem_to_hbm [thread:$0]  %s1174_s8, 32, %s1673_s4, [#allocation4]  }
 0xe0d   :  { %1512 = dma.done.wait [#allocation4], 32  }
 0xe0e   :  { %1513 = vsyncadd [#allocation4], 4294967264 }
 0xe0f   :  { %1180 = vsyncpa [#allocation3], 1 }
 0xe10   :  { %1181 = vsyncpa [#allocation6], 1 }
 0xe11   :  { %1182 = vsyncpa [#allocation4], 1 }

</bundles_post_ra>
